<compile_context>
chip_gen: v5e
topology: v5e:2x2
jax: 0.10.0
libtpu: 0.0.40
codegen_flags: <defaults>
</compile_context>

<pallas_src>
import math

import jax
import jax.numpy as jnp
import numpy as np
from jax.experimental import pallas as pl
from jax.experimental.pallas import tpu as pltpu

_LANE = 128
_SUBLANE = 8


def _round_up(n, m):
    return ((n + m - 1) // m) * m


def _make_mlp_kernel(n_layers):
    """Kernel over one batch tile: n_layers MXU matmuls + f32 bias/ReLU epilogues."""

    def kernel(*refs):
        x_ref = refs[0]
        o_ref = refs[-1]
        p_refs = refs[1:-1]                       # (w1, b1, w2, b2, ...)
        # f32 -> bf16 cast on the VPU inside the kernel (no wrapper-side cast op).
        h = x_ref[...].astype(jnp.bfloat16)
        for li in range(n_layers):                # unrolled at trace time
            w = p_refs[2 * li][...]
            b = p_refs[2 * li + 1][...]
            acc = jnp.dot(h, w, preferred_element_type=jnp.float32) + b
            if li + 1 < n_layers:
                h = jnp.maximum(acc, 0.0).astype(jnp.bfloat16)
            else:
                # Store only the true logit columns (e.g. 2) instead of the
                # 128-lane-padded slab: 8 B/row instead of 512 B/row.
                o_ref[...] = acc[:, : o_ref.shape[-1]]

    return kernel


def prepare_params(params):
    """One-time prep: cast weights to bf16 and zero-pad feature dims to 128.

    params: list of (W, b) with W shaped (in, out) and b shaped (out,), f32.
    Zero-padding is exact: padded output columns get bias 0 and stay 0 through
    ReLU, and the matching zero rows of the next weight contribute nothing.
    """
    prepped = []
    prev_out_pad = None
    out_dim = None
    for li, (w, b) in enumerate(params):
        in_dim, out_dim = w.shape
        in_pad = in_dim if li == 0 else prev_out_pad
        out_pad = _round_up(out_dim, _LANE)
        w_pad = jnp.zeros((in_pad, out_pad), jnp.float32).at[:in_dim, :out_dim].set(w)
        b_pad = jnp.zeros((1, out_pad), jnp.float32).at[:, :out_dim].set(
            jnp.asarray(b, jnp.float32).reshape(1, -1))
        prepped.append((w_pad.astype(jnp.bfloat16), b_pad))
        prev_out_pad = out_pad
    return prepped, out_dim


def _auto_batch_tile(B):
    # Default compromise: single step for small batches, 256-row tiles beyond.
    # v5e/v6e (1 TC): prefer fewer, larger steps (sweep 256/512/1024).
    # v7x (2 TCs):   prefer an even grid with >=2 steps per core (e.g. 128).
    return min(256, max(_SUBLANE, _round_up(B, _SUBLANE)))


def make_mlp_forward(params, *, batch_tile=None):
    """Hoisted one-time parameter prep; returns a jitted forward(x) closure."""
    prepped, out_dim = prepare_params(params)
    flat_params = [a for wb in prepped for a in wb]
    kernel = _make_mlp_kernel(len(prepped))

    def fwd(x):
        B, D = x.shape
        tile = batch_tile if batch_tile is not None else _auto_batch_tile(B)
        tile = max(_SUBLANE, _round_up(tile, _SUBLANE))
        grid = pl.cdiv(B, tile)

        # Batch-tiled f32 activations; weights/biases as grid-invariant full
        # blocks (constant index_map -> DMA'd once; ~150 KiB total in VMEM).
        in_specs = [pl.BlockSpec((tile, D), lambda i: (i, 0))]
        for a in flat_params:
            in_specs.append(pl.BlockSpec(a.shape, lambda i: (0, 0)))

        return pl.pallas_call(
            kernel,
            grid=(grid,),
            in_specs=in_specs,
            out_specs=pl.BlockSpec((tile, out_dim), lambda i: (i, 0)),
            out_shape=jax.ShapeDtypeStruct((B, out_dim), jnp.float32),
            compiler_params=pltpu.CompilerParams(
                dimension_semantics=("parallel",)),
        )(x, *flat_params)

    return jax.jit(fwd)


def init_mlp_params(key, input_dim, hidden_layers=(256, 128, 64), output_dim=2):
    """Xavier-uniform weights (matching nn.init.xavier_uniform_), zero biases."""
    params = []
    prev = input_dim
    dims = list(hidden_layers) + [output_dim]
    for d in dims:
        key, sub = jax.random.split(key)
        bound = math.sqrt(6.0 / (prev + d))
        w = jax.random.uniform(sub, (prev, d), jnp.float32,
                               minval=-bound, maxval=bound)
        b = jnp.zeros((d,), jnp.float32)
        params.append((w, b))
        prev = d
    return params


def mlp_reference(x, params):
    h = x
    for i, (w, b) in enumerate(params):
        h = h @ w + b.reshape(1, -1)
        if i < len(params) - 1:
            h = jnp.maximum(h, 0.0)
    return h


if __name__ == "__main__":
    key = jax.random.PRNGKey(0)
    k_x, k_x2, k_p = jax.random.split(key, 3)

    input_dim = 32
    params = init_mlp_params(k_p, input_dim,
                             hidden_layers=(256, 128, 64), output_dim=2)

    # One-time prep (pad + bf16 cast) hoisted out of the hot path.
    fwd = make_mlp_forward(params)

    # Small main case (single grid step).
    batch = 16
    x = jax.random.normal(k_x, (batch, input_dim), jnp.float32)
    out = jax.block_until_ready(fwd(x))
    ref = mlp_reference(x, params)
    assert out.shape == (batch, 2) and out.dtype == jnp.float32
    # bf16 operands with f32 accumulation -> looser tolerance than pure f32.
    assert np.allclose(np.asarray(out), np.asarray(ref), atol=5e-2, rtol=5e-2), (
        float(np.max(np.abs(np.asarray(out) - np.asarray(ref)))))

    # Ragged batch with no wrapper-side jnp.pad: relies on Pallas partial-block
    # handling (undefined rows never written back; no cross-row interaction).
    x9 = x[:9]
    out9 = jax.block_until_ready(fwd(x9))
    assert out9.shape == (9, 2)
    assert np.allclose(np.asarray(out9), np.asarray(mlp_reference(x9, params)),
                       atol=5e-2, rtol=5e-2)

    # Multi-step grid with a partial last block (explicit small tile).
    fwd_tiled = make_mlp_forward(params, batch_tile=64)
    x160 = jax.random.normal(k_x2, (160, input_dim), jnp.float32)
    out160 = jax.block_until_ready(fwd_tiled(x160))
    assert out160.shape == (160, 2)
    assert np.allclose(np.asarray(out160), np.asarray(mlp_reference(x160, params)),
                       atol=5e-2, rtol=5e-2)

    print("KERNEL_OK")
</pallas_src>

<mosaic_0001>
module attributes {stable_mosaic.version = 11 : i64} {
  func.func @kernel(%arg0: i32, %arg1: memref<16x32xf32, #tpu.memory_space<vmem>>, %arg2: memref<32x256xbf16, #tpu.memory_space<vmem>>, %arg3: memref<1x256xf32, #tpu.memory_space<vmem>>, %arg4: memref<256x128xbf16, #tpu.memory_space<vmem>>, %arg5: memref<1x128xf32, #tpu.memory_space<vmem>>, %arg6: memref<128x128xbf16, #tpu.memory_space<vmem>>, %arg7: memref<1x128xf32, #tpu.memory_space<vmem>>, %arg8: memref<128x128xbf16, #tpu.memory_space<vmem>>, %arg9: memref<1x128xf32, #tpu.memory_space<vmem>>, %arg10: memref<16x2xf32, #tpu.memory_space<vmem>>) attributes {dimension_semantics = [#tpu.dimension_semantics<parallel>], iteration_bounds = array<i64: 1>, scalar_prefetch = 0 : i64, scratch_operands = 0 : i64, tpu.core_type = #tpu.core_type<tc>, window_params = [{transform_indices = @transform_0, window_bounds = array<i64: 16, 32>}, {pipeline_mode = #tpu.pipeline_mode<synchronous>, transform_indices = @transform_1, window_bounds = array<i64: 32, 256>}, {pipeline_mode = #tpu.pipeline_mode<synchronous>, transform_indices = @transform_2, window_bounds = array<i64: 1, 256>}, {pipeline_mode = #tpu.pipeline_mode<synchronous>, transform_indices = @transform_3, window_bounds = array<i64: 256, 128>}, {pipeline_mode = #tpu.pipeline_mode<synchronous>, transform_indices = @transform_4, window_bounds = array<i64: 1, 128>}, {pipeline_mode = #tpu.pipeline_mode<synchronous>, transform_indices = @transform_5, window_bounds = array<i64: 128, 128>}, {pipeline_mode = #tpu.pipeline_mode<synchronous>, transform_indices = @transform_6, window_bounds = array<i64: 1, 128>}, {pipeline_mode = #tpu.pipeline_mode<synchronous>, transform_indices = @transform_7, window_bounds = array<i64: 128, 128>}, {pipeline_mode = #tpu.pipeline_mode<synchronous>, transform_indices = @transform_8, window_bounds = array<i64: 1, 128>}, {transform_indices = @transform_9, window_bounds = array<i64: 16, 2>}]} {
    %c0 = arith.constant 0 : index
    %c0_0 = arith.constant 0 : index
    %0 = vector.load %arg1[%c0, %c0_0] : memref<16x32xf32, #tpu.memory_space<vmem>>, vector<16x32xf32>
    %1 = arith.truncf %0 : vector<16x32xf32> to vector<16x32xbf16>
    %c0_1 = arith.constant 0 : index
    %c0_2 = arith.constant 0 : index
    %2 = vector.load %arg2[%c0_1, %c0_2] : memref<32x256xbf16, #tpu.memory_space<vmem>>, vector<32x256xbf16>
    %c0_3 = arith.constant 0 : index
    %c0_4 = arith.constant 0 : index
    %3 = vector.load %arg3[%c0_3, %c0_4] : memref<1x256xf32, #tpu.memory_space<vmem>>, vector<1x256xf32>
    %cst = arith.constant dense<0.000000e+00> : vector<16x256xf32>
    %4 = tpu.matmul %1, %2, %cst {dimension_numbers = #tpu.dot_dimension_numbers<[1], [0], [0], [1], [0, 0, 1, 1], [], []>} : vector<16x32xbf16>, vector<32x256xbf16>, vector<16x256xf32> -> vector<16x256xf32>
    %5 = vector.broadcast %3 : vector<1x256xf32> to vector<16x256xf32>
    %6 = arith.addf %4, %5 : vector<16x256xf32>
    %cst_5 = arith.constant 0.000000e+00 : f32
    %7 = vector.broadcast %cst_5 : f32 to vector<16x256xf32>
    %8 = arith.maximumf %6, %7 : vector<16x256xf32>
    %9 = arith.truncf %8 : vector<16x256xf32> to vector<16x256xbf16>
    %c0_6 = arith.constant 0 : index
    %c0_7 = arith.constant 0 : index
    %10 = vector.load %arg4[%c0_6, %c0_7] : memref<256x128xbf16, #tpu.memory_space<vmem>>, vector<256x128xbf16>
    %c0_8 = arith.constant 0 : index
    %c0_9 = arith.constant 0 : index
    %11 = vector.load %arg5[%c0_8, %c0_9] : memref<1x128xf32, #tpu.memory_space<vmem>>, vector<1x128xf32>
    %cst_10 = arith.constant dense<0.000000e+00> : vector<16x128xf32>
    %12 = tpu.matmul %9, %10, %cst_10 {dimension_numbers = #tpu.dot_dimension_numbers<[1], [0], [0], [1], [0, 0, 1, 1], [], []>} : vector<16x256xbf16>, vector<256x128xbf16>, vector<16x128xf32> -> vector<16x128xf32>
    %13 = vector.broadcast %11 : vector<1x128xf32> to vector<16x128xf32>
    %14 = arith.addf %12, %13 : vector<16x128xf32>
    %cst_11 = arith.constant 0.000000e+00 : f32
    %15 = vector.broadcast %cst_11 : f32 to vector<16x128xf32>
    %16 = arith.maximumf %14, %15 : vector<16x128xf32>
    %17 = arith.truncf %16 : vector<16x128xf32> to vector<16x128xbf16>
    %c0_12 = arith.constant 0 : index
    %c0_13 = arith.constant 0 : index
    %18 = vector.load %arg6[%c0_12, %c0_13] : memref<128x128xbf16, #tpu.memory_space<vmem>>, vector<128x128xbf16>
    %c0_14 = arith.constant 0 : index
    %c0_15 = arith.constant 0 : index
    %19 = vector.load %arg7[%c0_14, %c0_15] : memref<1x128xf32, #tpu.memory_space<vmem>>, vector<1x128xf32>
    %cst_16 = arith.constant dense<0.000000e+00> : vector<16x128xf32>
    %20 = tpu.matmul %17, %18, %cst_16 {dimension_numbers = #tpu.dot_dimension_numbers<[1], [0], [0], [1], [0, 0, 1, 1], [], []>} : vector<16x128xbf16>, vector<128x128xbf16>, vector<16x128xf32> -> vector<16x128xf32>
    %21 = vector.broadcast %19 : vector<1x128xf32> to vector<16x128xf32>
    %22 = arith.addf %20, %21 : vector<16x128xf32>
    %cst_17 = arith.constant 0.000000e+00 : f32
    %23 = vector.broadcast %cst_17 : f32 to vector<16x128xf32>
    %24 = arith.maximumf %22, %23 : vector<16x128xf32>
    %25 = arith.truncf %24 : vector<16x128xf32> to vector<16x128xbf16>
    %c0_18 = arith.constant 0 : index
    %c0_19 = arith.constant 0 : index
    %26 = vector.load %arg8[%c0_18, %c0_19] : memref<128x128xbf16, #tpu.memory_space<vmem>>, vector<128x128xbf16>
    %c0_20 = arith.constant 0 : index
    %c0_21 = arith.constant 0 : index
    %27 = vector.load %arg9[%c0_20, %c0_21] : memref<1x128xf32, #tpu.memory_space<vmem>>, vector<1x128xf32>
    %cst_22 = arith.constant dense<0.000000e+00> : vector<16x128xf32>
    %28 = tpu.matmul %25, %26, %cst_22 {dimension_numbers = #tpu.dot_dimension_numbers<[1], [0], [0], [1], [0, 0, 1, 1], [], []>} : vector<16x128xbf16>, vector<128x128xbf16>, vector<16x128xf32> -> vector<16x128xf32>
    %29 = vector.broadcast %27 : vector<1x128xf32> to vector<16x128xf32>
    %30 = arith.addf %28, %29 : vector<16x128xf32>
    %31 = vector.extract_strided_slice %30 {offsets = [0, 0], sizes = [16, 2], strides = [1, 1]} : vector<16x128xf32> to vector<16x2xf32>
    %c0_23 = arith.constant 0 : index
    %c0_24 = arith.constant 0 : index
    %32 = vector.load %arg10[%c0_23, %c0_24] : memref<16x2xf32, #tpu.memory_space<vmem>>, vector<16x2xf32>
    tpu.vector_store %arg10[%c0_23, %c0_24], %31 {strides = array<i32>} : memref<16x2xf32, #tpu.memory_space<vmem>>, vector<16x2xf32>,
    return
  }
  func.func @transform_0(%arg0: i32) -> (i32, i32) {
    %c0_i32 = arith.constant 0 : i32
    %c0_i32_0 = arith.constant 0 : i32
    return %arg0, %c0_i32 : i32, i32
  }
  func.func @transform_1(%arg0: i32) -> (i32, i32) {
    %c0_i32 = arith.constant 0 : i32
    %c0_i32_0 = arith.constant 0 : i32
    %c0_i32_1 = arith.constant 0 : i32
    return %c0_i32, %c0_i32_0 : i32, i32
  }
  func.func @transform_2(%arg0: i32) -> (i32, i32) {
    %c0_i32 = arith.constant 0 : i32
    %c0_i32_0 = arith.constant 0 : i32
    %c0_i32_1 = arith.constant 0 : i32
    return %c0_i32, %c0_i32_0 : i32, i32
  }
  func.func @transform_3(%arg0: i32) -> (i32, i32) {
    %c0_i32 = arith.constant 0 : i32
    %c0_i32_0 = arith.constant 0 : i32
    %c0_i32_1 = arith.constant 0 : i32
    return %c0_i32, %c0_i32_0 : i32, i32
  }
  func.func @transform_4(%arg0: i32) -> (i32, i32) {
    %c0_i32 = arith.constant 0 : i32
    %c0_i32_0 = arith.constant 0 : i32
    %c0_i32_1 = arith.constant 0 : i32
    return %c0_i32, %c0_i32_0 : i32, i32
  }
  func.func @transform_5(%arg0: i32) -> (i32, i32) {
    %c0_i32 = arith.constant 0 : i32
    %c0_i32_0 = arith.constant 0 : i32
    %c0_i32_1 = arith.constant 0 : i32
    return %c0_i32, %c0_i32_0 : i32, i32
  }
  func.func @transform_6(%arg0: i32) -> (i32, i32) {
    %c0_i32 = arith.constant 0 : i32
    %c0_i32_0 = arith.constant 0 : i32
    %c0_i32_1 = arith.constant 0 : i32
    return %c0_i32, %c0_i32_0 : i32, i32
  }
  func.func @transform_7(%arg0: i32) -> (i32, i32) {
    %c0_i32 = arith.constant 0 : i32
    %c0_i32_0 = arith.constant 0 : i32
    %c0_i32_1 = arith.constant 0 : i32
    return %c0_i32, %c0_i32_0 : i32, i32
  }
  func.func @transform_8(%arg0: i32) -> (i32, i32) {
    %c0_i32 = arith.constant 0 : i32
    %c0_i32_0 = arith.constant 0 : i32
    %c0_i32_1 = arith.constant 0 : i32
    return %c0_i32, %c0_i32_0 : i32, i32
  }
  func.func @transform_9(%arg0: i32) -> (i32, i32) {
    %c0_i32 = arith.constant 0 : i32
    %c0_i32_0 = arith.constant 0 : i32
    return %arg0, %c0_i32 : i32, i32
  }
}

</mosaic_0001>

<bundles_post_ra>
// kernel: fwd.1
= control target key start
LH: loop header
LB: loop body
LE: loop exit
PB: predicated region body
PF: predicated region fallthrough
CT: control target
= control target key end

     0   :  { %14 = vsyncpa [#allocation3], 0  ;;  %s934_s0 = inlined_call_operand.hbm [shape: f32[16,32], index: 0, kind: input, shape index: {}]   ;;  %s935_s1 = inlined_call_operand.hbm [shape: bf16[32,256], index: 1, kind: input, shape index: {}]   ;;  %s936_s2 = inlined_call_operand.vmem [shape: f32[1,256], index: 2, kind: input, shape index: {}]   ;;  %s937_s3 = inlined_call_operand.hbm [shape: bf16[256,128], index: 3, kind: input, shape index: {}]   ;;  %s938_s4 = inlined_call_operand.vmem [shape: f32[1,128], index: 4, kind: input, shape index: {}, may-alias: {4,6,8}]   ;;  %s939_s5 = inlined_call_operand.hbm [shape: bf16[128,128], index: 5, kind: input, shape index: {}]   ;;  %s940_s6 = inlined_call_operand.vmem [shape: f32[1,128], index: 6, kind: input, shape index: {}, may-alias: {4,6,8}]   ;;  %s941_s7 = inlined_call_operand.hbm [shape: bf16[128,128], index: 7, kind: input, shape index: {}]   ;;  %s942_s8 = inlined_call_operand.vmem [shape: f32[1,128], index: 8, kind: input, shape index: {}, may-alias: {4,6,8}]   ;;  %s943_s9 = inlined_call_operand.vmem [shape: f32[16,2], index: 9, kind: output, shape index: {}]  }
   0x1   :  { %15 = vsyncpa [#allocation5], 0 }
   0x2   :  { %16 = vsyncpa [#allocation8], 0  ;;  %s34_s11 = sshll.u32 %s935_s1, 4  ;;  %s842_s12 = smov [#allocation4]   ;;  %s35_s11 = int_to_ptr.hbm [resolvable:$true] %s34_s11 }
   0x3   :  { %s36_s13 = sshll.u32 %s842_s12, 4  ;;  %s843_s14 = smov 128   ;;  %s37_s13 = int_to_ptr.vmem [resolvable:$true] %s36_s13 }
   0x4   :  { %s844_s15 = smov 8   ;;  %s64_s18 = sshll.u32 %s939_s5, 4  ;;  %s65_s18 = int_to_ptr.hbm [resolvable:$true] %s64_s18 }
   0x5   :  { %42 = dma.hbm_to_vmem [thread:$0]  %s35_s11, 512, %s37_s13, [#allocation5], %s843_s14, %s843_s14, %s844_s15  }
   0x6   :  { %s845_s19 = smov [#allocation7]   ;;  %s21_s23 = sshll.u32 %s934_s0, 4  ;;  %s22_s23 = int_to_ptr.hbm [resolvable:$true] %s21_s23 }
   0x7   :  { %s66_s20 = sshll.u32 %s845_s19, 4  ;;  %s846_s1 = smov 64   ;;  %s67_s20 = int_to_ptr.vmem [resolvable:$true] %s66_s20 }
   0x8   :  { %s847_s24 = smov 4   ;;  %s49_s27 = sshll.u32 %s937_s3, 4  ;;  %s50_s27 = int_to_ptr.hbm [resolvable:$true] %s49_s27 }
   0x9   :  { %72 = dma.hbm_to_vmem [thread:$0]  %s65_s18, 1024, %s67_s20, [#allocation8], %s846_s1, %s846_s1, %s847_s24  }
   0xa   :  { %s848_s28 = smov [#allocation2]   ;;  %s849_s5 = smov [#allocation6]  }
   0xb   :  { %s23_s29 = sshll.u32 %s848_s28, 4  ;;  %s51_s30 = sshll.u32 %s849_s5, 4  ;;  %s24_s29 = int_to_ptr.vmem [resolvable:$true] %s23_s29  ;;  %s52_s30 = int_to_ptr.vmem [resolvable:$true] %s51_s30 }
   0xc   :  { %29 = dma.hbm_to_vmem [thread:$0]  %s22_s23, 256, %s24_s29, [#allocation3], %s843_s14, %s843_s14, %s844_s15  }
   0xd   :  { %s79_s0 = sshll.u32 %s941_s7, 4  ;;  %s850_s12 = smov [#allocation9]   ;;  %s80_s0 = int_to_ptr.hbm [resolvable:$true] %s79_s0 }
   0xe   :  { %57 = dma.hbm_to_vmem [thread:$0]  %s50_s27, 2048, %s52_s30, [#allocation5], %s846_s1, %s846_s1, %s847_s24  }
   0xf   :  { %s81_s13 = sshll.u32 %s850_s12, 4  ;;  %s82_s13 = int_to_ptr.vmem [resolvable:$true] %s81_s13 }
  0x10   :  { %87 = dma.hbm_to_vmem [thread:$0]  %s80_s0, 1024, %s82_s13, [#allocation8], %s846_s1, %s846_s1, %s847_s24  }
  0x11   :  { %836 = dma.done.wait [#allocation3], 256  }
  0x12   :  { %837 = vsyncadd [#allocation3], 4294967040 }
  0x13   :  { %838 = dma.done.wait [#allocation5], 2560  }
  0x14   :  { %839 = vsyncadd [#allocation5], 4294964736 }
  0x15   :  { %840 = dma.done.wait [#allocation8], 2048  }
  0x16   :  { %841 = vsyncadd [#allocation8], 4294965248  ;;  %v532_v0 = vld [vmem:[#allocation4 + $0x10] sm:$0xf]  ;;  %v671_v1 = vld [vmem:[#allocation4 + $0x14] sm:$0xf0] }
  0x17   :  { %v670_v2 = vld [vmem:[#allocation4 + $0x14] sm:$0xf]  ;;  %v533_v3 = vor.u32 %v671_v1, %v532_v0  ;;  %v534_v4 = vld [vmem:[#allocation4 + $0x18] sm:$0xf0]  ;;  %v524_v5 = vld [vmem:[#allocation4] sm:$0xf] }
  0x18   :  { %v669_v6 = vld [vmem:[#allocation4 + $0x4] sm:$0xf0]  ;;  %v537_v7 = vor.u32 %v670_v2, %v534_v4  ;;  %v668_v8 = vld [vmem:[#allocation4 + $0x4] sm:$0xf]  ;;  %v526_v9 = vld [vmem:[#allocation4 + $0x8] sm:$0xf0] }
  0x19   :  { %v111_v10 = vld [vmem:[#allocation2] sm:$0xff]  ;;  %154 = vmatpush.bf16.msra.mxu0 %v533_v3  ;;  %v525_v11 = vor.u32 %v669_v6, %v524_v5  ;;  %v112_v12 = vld [vmem:[#allocation2 + $0x8] sm:$0xff]  ;;  %v529_v15 = vor.u32 %v668_v8, %v526_v9  ;;  %vm144_vm0 = vcmask 261120   ;;  %v677_v19 = vld [vmem:[#allocation6 + $0x28] sm:$0xff]  ;;  %vm512_vm1 = vcmask 15360  }
  0x1a   :  { %v679_v13 = vld [vmem:[#allocation6 + $0x38] sm:$0xff]  ;;  %168 = vmatpush.bf16.msra.mxu1 %v537_v7  ;;  %v678_v16 = vld [vmem:[#allocation6 + $0x30] sm:$0xff]  ;;  %v113_v18 = vpack.c.bf16 %v112_v12, %v111_v10  ;;  %v685_v20 = vld [vmem:[#allocation6 + $0x68] sm:$0xff] }
  0x1b   :  { %v687_v14 = vld [vmem:[#allocation6 + $0x78] sm:$0xff]  ;;  %314 = vmatpush.bf16.msra.mxu2 %v679_v13  ;;  %v686_v17 = vld [vmem:[#allocation6 + $0x70] sm:$0xff]  ;;  %v676_v21 = vld [vmem:[#allocation6 + $0x20] sm:$0xff] }
  0x1c   :  { %328 = vmatpush.bf16.msra.mxu3 %v687_v14  ;;  %v684_v22 = vld [vmem:[#allocation6 + $0x60] sm:$0xff]  ;;  %v675_v23 = vld [vmem:[#allocation6 + $0x18] sm:$0xff]  ;;  %v674_v25 = vld [vmem:[#allocation6 + $0x10] sm:$0xff] }
  0x1d   :  { %155 = vmatpush.bf16.msra.mxu0 %v525_v11  ;;  %v683_v24 = vld [vmem:[#allocation6 + $0x58] sm:$0xff]  ;;  %v682_v26 = vld [vmem:[#allocation6 + $0x50] sm:$0xff]  ;;  %v673_v27 = vld [vmem:[#allocation6 + $0x8] sm:$0xff] }
  0x1e   :  { %169 = vmatpush.bf16.msra.mxu1 %v529_v15  ;;  %v681_v28 = vld [vmem:[#allocation6 + $0x48] sm:$0xff]  ;;  %v672_v29 = vld [vmem:[#allocation6] sm:$0xff]  ;;  %v695_v31 = vld [vmem:[#allocation7 + $0x38] sm:$0xff] }
  0x1f   :  { %315 = vmatpush.bf16.msra.mxu2 %v678_v16  ;;  %v680_v30 = vld [vmem:[#allocation6 + $0x40] sm:$0xff]  ;;  %v694_v32 = vld [vmem:[#allocation7 + $0x30] sm:$0xff]  ;;  %v693_v33 = vld [vmem:[#allocation7 + $0x28] sm:$0xff] }
  0x20   :  { %329 = vmatpush.bf16.msra.mxu3 %v686_v17  ;;  %538 = vmatmul.msk.bf16.vlgmr.msra.gmra.mxu0 %vm144_vm0, %v113_v18  ;;  %v692_v34 = vld [vmem:[#allocation7 + $0x20] sm:$0xff]  ;;  %v118_v35 = vld [vmem:[%s936_s2] sm:$0x3]  ;;  %v691_v52 = vld [vmem:[#allocation7 + $0x18] sm:$0xff] }
  0x21   :  { %539 = vmatmul.msk.bf16.vlgmr.msra.gmra.mxu1 %vm144_vm0, %v113_v18  ;;  %413 = vmatpush.bf16.msrb.mxu0 %v695_v31  ;;  %v120_v38 = vperm.slane %v118_v35, 0  ;;  %v121_v39 = vperm.slane %v118_v35, 1  ;;  %v690_v53 = vld [vmem:[#allocation7 + $0x10] sm:$0xff]  ;;  %v689_v54 = vld [vmem:[#allocation7 + $0x8] sm:$0xff]  ;;  %v688_v55 = vld [vmem:[#allocation7] sm:$0xff] }
  0x22   :  { %v703_v56 = vld [vmem:[#allocation9 + $0x38] sm:$0xff]  ;;  %v702_v57 = vld [vmem:[#allocation9 + $0x30] sm:$0xff]  ;;  %v701_v58 = vld [vmem:[#allocation9 + $0x28] sm:$0xff] }
  0x23   :  { %316 = vmatpush.bf16.msra.mxu2 %v677_v19  ;;  %498 = vmatpush.bf16.msrb.mxu1 %v703_v56  ;;  %v700_v59 = vld [vmem:[#allocation9 + $0x20] sm:$0xff]  ;;  %v713_v61 = vld [vmem:[%s938_s4] ss:$0 sm:$0xff]  ;;  %v699_v8 = vld [vmem:[#allocation9 + $0x18] sm:$0xff] }
  0x24   :  { %330 = vmatpush.bf16.msra.mxu3 %v685_v20  ;;  %v698_v9 = vld [vmem:[#allocation9 + $0x10] sm:$0xff]  ;;  %v697_v10 = vld [vmem:[#allocation9 + $0x8] sm:$0xff]  ;;  %v696_v11 = vld [vmem:[#allocation9] sm:$0xff] }
  0x25   :  { %414 = vmatpush.bf16.msrb.mxu0 %v694_v32  ;;  %v714_v13 = vld [vmem:[%s940_s6] ss:$0 sm:$0xff] }
  0x26   :  { %v715_v20 = vld [vmem:[%s942_s8] ss:$0 sm:$0xff] }
  0x27   :  { %317 = vmatpush.bf16.msra.mxu2 %v676_v21  ;;  %499 = vmatpush.bf16.msrb.mxu1 %v702_v57 }
  0x28   :  { %331 = vmatpush.bf16.msra.mxu3 %v684_v22 }
  0x29   :  { %415 = vmatpush.bf16.msrb.mxu0 %v693_v33 }
  0x2b   :  { %318 = vmatpush.bf16.msra.mxu2 %v675_v23  ;;  %500 = vmatpush.bf16.msrb.mxu1 %v701_v58 }
  0x2c   :  { %332 = vmatpush.bf16.msra.mxu3 %v683_v24 }
  0x2d   :  { %416 = vmatpush.bf16.msrb.mxu0 %v692_v34 }
  0x2f   :  { %319 = vmatpush.bf16.msra.mxu2 %v674_v25  ;;  %501 = vmatpush.bf16.msrb.mxu1 %v700_v59 }
  0x30   :  { %333 = vmatpush.bf16.msra.mxu3 %v682_v26 }
  0x31   :  { %417 = vmatpush.bf16.msrb.mxu0 %v691_v52 }
  0x33   :  { %320 = vmatpush.bf16.msra.mxu2 %v673_v27  ;;  %502 = vmatpush.bf16.msrb.mxu1 %v699_v8 }
  0x34   :  { %334 = vmatpush.bf16.msra.mxu3 %v681_v28 }
  0x35   :  { %418 = vmatpush.bf16.msrb.mxu0 %v690_v53 }
  0x37   :  { %321 = vmatpush.bf16.msra.mxu2 %v672_v29  ;;  %503 = vmatpush.bf16.msrb.mxu1 %v698_v9 }
  0x38   :  { %335 = vmatpush.bf16.msra.mxu3 %v680_v30 }
  0x39   :  { %419 = vmatpush.bf16.msrb.mxu0 %v689_v54 }
  0x3b   :  { %504 = vmatpush.bf16.msrb.mxu1 %v697_v10 }
  0x3d   :  { %420 = vmatpush.bf16.msrb.mxu0 %v688_v55 }
  0x3f   :  { %505 = vmatpush.bf16.msrb.mxu1 %v696_v11 }
  0x9d   :  { %v157_v36 = vpop.f32.mrf.mxu0 }
  0x9e   :  { %v171_v37 = vpop.f32.mrf.mxu1  ;;  %v158_v40 = vadd.f32 %v157_v36, %v120_v38 }
  0x9f   :  { %v172_v41 = vadd.f32 %v171_v37, %v121_v39 }
  0xa0   :  { %v176_v46 = vmax.f32 %v158_v40, 0.0 }
  0xa1   :  { %v177_v48 = vmax.f32 %v172_v41, 0.0 }
  0xa5   :  { %v159_v42 = vpop.f32.mrf.mxu0 }
  0xa6   :  { %v160_v43 = vadd.f32 %v159_v42, %v120_v38  ;;  %v173_v44 = vpop.f32.mrf.mxu1 }
  0xa7   :  { %v174_v45 = vadd.f32 %v173_v44, %v121_v39 }
  0xa8   :  { %v178_v47 = vmax.f32 %v160_v43, 0.0 }
  0xa9   :  { %v179_v49 = vmax.f32 %v174_v45, 0.0 }
  0xaa   :  { %v180_v50 = vpack.c.bf16 %v178_v47, %v176_v46 }
  0xab   :  { %v181_v51 = vpack.c.bf16 %v179_v49, %v177_v48 }
  0xac   :  { %322 = vmatmul.bf16.vlgmr.msra.gmra.mxu2 %v180_v50 }
  0xad   :  { %336 = vmatmul.bf16.vlgmr.msra.gmra.mxu3 %v181_v51 }
 0x12f   :  { %v323_v60 = vpop.f32.mrf.mxu2 }
 0x130   :  { %v337_v62 = vpop.f32.mrf.mxu3  ;;  %v324_v63 = vadd.f32 %v713_v61, %v323_v60 }
 0x132   :  { %v338_v1 = vadd.f32 %v337_v62, %v324_v63 }
 0x134   :  { %v342_v5 = vmax.f32 %v338_v1, 0.0 }
 0x137   :  { %v325_v0 = vpop.f32.mrf.mxu2 }
 0x138   :  { %v326_v2 = vadd.f32 %v713_v61, %v325_v0  ;;  %v339_v3 = vpop.f32.mrf.mxu3 }
 0x13a   :  { %v340_v4 = vadd.f32 %v339_v3, %v326_v2 }
 0x13c   :  { %v343_v6 = vmax.f32 %v340_v4, 0.0 }
 0x13e   :  { %v344_v7 = vpack.c.bf16 %v343_v6, %v342_v5 }
 0x140   :  { %421 = vmatmul.bf16.vlgmr.msrb.gmra.mxu0 %v344_v7 }
 0x1bd   :  { %v422_v12 = vpop.f32.mrf.mxu0 }
 0x1be   :  { %v423_v14 = vadd.f32 %v714_v13, %v422_v12 }
 0x1c0   :  { %v427_v17 = vmax.f32 %v423_v14, 0.0 }
 0x1c5   :  { %v424_v15 = vpop.f32.mrf.mxu0 }
 0x1c6   :  { %v425_v16 = vadd.f32 %v714_v13, %v424_v15 }
 0x1c8   :  { %v428_v18 = vmax.f32 %v425_v16, 0.0 }
 0x1ca   :  { %v429_v19 = vpack.c.bf16 %v428_v18, %v427_v17 }
 0x1cc   :  { %506 = vmatmul.bf16.vlgmr.msrb.gmra.mxu1 %v429_v19 }
 0x249   :  { %v507_v21 = vpop.f32.mrf.mxu1 }
 0x24a   :  { %v508_v22 = vadd.f32 %v715_v20, %v507_v21 }
 0x24c   :  { %513 = vst.msk [vmem:[%s943_s9] sm:$0xff] %vm512_vm1, %v508_v22 }
 0x251   :  { %v509_v23 = vpop.f32.mrf.mxu1 }
 0x252   :  { %v510_v24 = vadd.f32 %v715_v20, %v509_v23 }
 0x254   :  { %514 = vst.msk [vmem:[%s943_s9 + $0x8] sm:$0xff] %vm512_vm1, %v510_v24 }
 0x255   :  { %519 = vsyncpa [#allocation3], 1 }
 0x256   :  { %520 = vsyncpa [#allocation5], 1 }
 0x257   :  { %521 = vsyncpa [#allocation8], 1 }

</bundles_post_ra>
